<compile_context>
chip_gen: v5e
topology: v5e:2x2
jax: 0.10.0
libtpu: 0.0.40
codegen_flags: <defaults>
</compile_context>

<pallas_src>
import functools

import jax
import jax.numpy as jnp
from jax.experimental import pallas as pl
from jax.experimental.pallas import tpu as pltpu


def _round_up(x, m):
    return (x + m - 1) // m * m


def _global_mean_pool_kernel(batch_ref, z_ref, out_ref, acc_ref, *, count_col):
    """One grid step over a TN-node tile.

    batch_ref : (1, TN)   int32      graph id per node (-1 => padding node)
    z_ref     : (TN, Daug)           node features, ones column at `count_col`
    out_ref   : (Bpad, Daug)         per-graph mean (written on last step only)
    acc_ref   : (Bpad, Daug) float32 running per-graph sums (+ counts column)
    """
    k = pl.program_id(0)

    @pl.when(k == 0)
    def _():
        acc_ref[...] = jnp.zeros_like(acc_ref)

    b_pad = acc_ref.shape[0]
    tn = z_ref.shape[0]

    batch = batch_ref[...]                                          # (1, TN)
    graph_ids = jax.lax.broadcasted_iota(jnp.int32, (b_pad, tn), 0)  # (Bpad, TN)
    one_hot = (graph_ids == batch).astype(z_ref.dtype)               # (Bpad, TN)

    # Per-graph feature sums AND node counts in a single MXU matmul
    # (z carries a ones column at `count_col`); accumulation stays f32.
    acc_ref[...] += jnp.dot(one_hot, z_ref[...],
                            preferred_element_type=jnp.float32)

    @pl.when(k == pl.num_programs(0) - 1)
    def _():
        acc = acc_ref[...]
        counts = acc[:, count_col:count_col + 1]                     # (Bpad, 1)
        inv = pl.reciprocal(jnp.maximum(counts, 1.0), approx=True)   # EUP slot
        out_ref[...] = (acc * inv).astype(out_ref.dtype)


def pooling_forward(z, batch, num_graphs, *, block_n=1024, compute_dtype=None):
    """global_mean_pool(z, batch) -> [num_graphs, hidden]."""
    n_nodes, hidden = z.shape
    if compute_dtype is None:
        compute_dtype = z.dtype

    # ---- TPU-friendly padding -------------------------------------------
    d_aug = _round_up(hidden + 1, 128)                 # hidden + counts col -> lane multiple
    b_pad = max(_round_up(num_graphs, 8), 8)           # graphs -> sublane multiple
    tn = min(_round_up(block_n, 128), _round_up(n_nodes, 128))  # node tile (lane-aligned)
    n_pad = _round_up(n_nodes, tn)

    # z_aug = [ z | 1 | 0-pad ]  (ones column folds counts into the matmul)
    z_aug = jnp.concatenate([z, jnp.ones((n_nodes, 1), z.dtype)], axis=1)
    z_aug = jnp.pad(z_aug, ((0, n_pad - n_nodes), (0, d_aug - (hidden + 1))))
    z_aug = z_aug.astype(compute_dtype)

    # padded nodes get batch id -1 -> match no graph -> contribute nothing
    batch_pad = jnp.pad(batch.astype(jnp.int32), (0, n_pad - n_nodes),
                        constant_values=-1).reshape(1, n_pad)

    grid = (n_pad // tn,)

    # VMEM budget: double-buffered input tiles + output + f32 accumulator (+ margin)
    itemsize = jnp.dtype(compute_dtype).itemsize
    vmem_bytes = (2 * tn * d_aug * itemsize            # z tile, double-buffered
                  + 2 * 8 * tn * 4                     # batch tile (sublane-padded)
                  + 3 * b_pad * d_aug * 4)             # out (x2 buffers) + accumulator
    vmem_limit = int(min(32 << 20, max(2 * vmem_bytes + (4 << 20), 16 << 20)))

    kernel = functools.partial(_global_mean_pool_kernel, count_col=hidden)

    out_padded = pl.pallas_call(
        kernel,
        out_shape=jax.ShapeDtypeStruct((b_pad, d_aug), z.dtype),
        grid_spec=pltpu.PrefetchScalarGridSpec(
            num_scalar_prefetch=0,
            grid=grid,
            in_specs=[
                pl.BlockSpec((1, tn), lambda k: (0, k)),       # batch ids
                pl.BlockSpec((tn, d_aug), lambda k: (k, 0)),   # node features
            ],
            out_specs=pl.BlockSpec((b_pad, d_aug), lambda k: (0, 0)),
            scratch_shapes=[pltpu.VMEM((b_pad, d_aug), jnp.float32)],
        ),
        compiler_params=pltpu.CompilerParams(
            dimension_semantics=("arbitrary",),   # reduction axis carries the accumulator
            vmem_limit_bytes=vmem_limit,
        ),
    )(batch_pad, z_aug)

    return out_padded[:num_graphs, :hidden]


if __name__ == "__main__":
    key = jax.random.PRNGKey(0)

    num_nodes = 300   # total nodes across the mini-batch of graphs
    hidden = 32       # node feature dim
    num_graphs = 3    # graphs in the mini-batch

    kz, _ = jax.random.split(key)
    z = jax.random.normal(kz, (num_nodes, hidden), dtype=jnp.float32)
    # node -> graph assignment (sorted, torch_geometric convention)
    sizes = (120, 100, 80)
    batch = jnp.concatenate(
        [jnp.full((s,), g, jnp.int32) for g, s in enumerate(sizes)])

    # small block_n so the test exercises the multi-step node grid + accumulator
    out = pooling_forward(z, batch, num_graphs, block_n=128)
    out = jax.block_until_ready(out)

    # Pure-JAX reference (segment mean).
    seg_sum = jax.ops.segment_sum(z, batch, num_segments=num_graphs)
    seg_cnt = jax.ops.segment_sum(jnp.ones((num_nodes, 1), jnp.float32), batch,
                                  num_segments=num_graphs)
    ref = seg_sum / jnp.maximum(seg_cnt, 1.0)

    assert out.shape == (num_graphs, hidden)
    assert jnp.allclose(out, ref, atol=5e-3, rtol=5e-3), \
        float(jnp.max(jnp.abs(out - ref)))

    # bf16 MXU path (v5e/v6e recommendation); accumulation stays f32.
    out_bf16 = jax.block_until_ready(
        pooling_forward(z, batch, num_graphs, block_n=128,
                        compute_dtype=jnp.bfloat16))
    assert jnp.allclose(out_bf16, ref, atol=2e-2, rtol=2e-2)

    # NOTE: the wrapped `pooling_layer` has no learnable parameters; mean
    # pooling is assumed (global_mean_pool).  Sum/max pooling would only
    # change the in-kernel reduction/epilogue.
    print("KERNEL_OK")
</pallas_src>

<mosaic_0001>
module attributes {stable_mosaic.version = 11 : i64} {
  func.func @_global_mean_pool_kernel(%arg0: i32, %arg1: memref<1x128xi32, #tpu.memory_space<vmem>>, %arg2: memref<128x128xf32, #tpu.memory_space<vmem>>, %arg3: memref<8x128xf32, #tpu.memory_space<vmem>>, %arg4: memref<8x128xf32, #tpu.memory_space<vmem>>) attributes {dimension_semantics = [#tpu.dimension_semantics<arbitrary>], iteration_bounds = array<i64: 3>, scalar_prefetch = 0 : i64, scratch_operands = 1 : i64, tpu.core_type = #tpu.core_type<tc>, window_params = [{transform_indices = @transform_0, window_bounds = array<i64: 1, 128>}, {transform_indices = @transform_1, window_bounds = array<i64: 128, 128>}, {pipeline_mode = #tpu.pipeline_mode<synchronous>, transform_indices = @transform_2, window_bounds = array<i64: 8, 128>}]} {
    %c0_i32 = arith.constant 0 : i32
    %0 = arith.cmpi eq, %arg0, %c0_i32 : i32
    %1 = arith.extui %0 : i1 to i32
    %c0_i32_0 = arith.constant 0 : i32
    %2 = arith.cmpi ne, %1, %c0_i32_0 : i32
    scf.if %2 {
      %cst_9 = arith.constant 0.000000e+00 : f32
      %17 = vector.broadcast %cst_9 : f32 to vector<8x128xf32>
      %c0_10 = arith.constant 0 : index
      %c0_11 = arith.constant 0 : index
      %18 = vector.load %arg4[%c0_10, %c0_11] : memref<8x128xf32, #tpu.memory_space<vmem>>, vector<8x128xf32>
      tpu.vector_store %arg4[%c0_10, %c0_11], %17 {strides = array<i32>} : memref<8x128xf32, #tpu.memory_space<vmem>>, vector<8x128xf32>,
    } else {
    }
    %c0 = arith.constant 0 : index
    %c0_1 = arith.constant 0 : index
    %3 = vector.load %arg1[%c0, %c0_1] : memref<1x128xi32, #tpu.memory_space<vmem>>, vector<1x128xi32>
    %4 = tpu.iota {dimensions = array<i32: 0>} : vector<8x128xi32>
    %5 = vector.broadcast %3 : vector<1x128xi32> to vector<8x128xi32>
    %6 = arith.cmpi eq, %4, %5 : vector<8x128xi32>
    %7 = arith.extui %6 : vector<8x128xi1> to vector<8x128xi32>
    %8 = arith.sitofp %7 : vector<8x128xi32> to vector<8x128xf32>
    %c0_2 = arith.constant 0 : index
    %c0_3 = arith.constant 0 : index
    %9 = vector.load %arg4[%c0_2, %c0_3] : memref<8x128xf32, #tpu.memory_space<vmem>>, vector<8x128xf32>
    %c0_4 = arith.constant 0 : index
    %c0_5 = arith.constant 0 : index
    %10 = vector.load %arg2[%c0_4, %c0_5] : memref<128x128xf32, #tpu.memory_space<vmem>>, vector<128x128xf32>
    %cst = arith.constant dense<0.000000e+00> : vector<8x128xf32>
    %11 = tpu.matmul %8, %10, %cst {dimension_numbers = #tpu.dot_dimension_numbers<[1], [0], [0], [1], [0, 0, 1, 1], [], []>} : vector<8x128xf32>, vector<128x128xf32>, vector<8x128xf32> -> vector<8x128xf32>
    %12 = arith.addf %9, %11 : vector<8x128xf32>
    %c0_6 = arith.constant 0 : index
    %c0_7 = arith.constant 0 : index
    %13 = vector.load %arg4[%c0_6, %c0_7] : memref<8x128xf32, #tpu.memory_space<vmem>>, vector<8x128xf32>
    tpu.vector_store %arg4[%c0_6, %c0_7], %12 {strides = array<i32>} : memref<8x128xf32, #tpu.memory_space<vmem>>, vector<8x128xf32>,
    %c2_i32 = arith.constant 2 : i32
    %14 = arith.cmpi eq, %arg0, %c2_i32 : i32
    %15 = arith.extui %14 : i1 to i32
    %c0_i32_8 = arith.constant 0 : i32
    %16 = arith.cmpi ne, %15, %c0_i32_8 : i32
    scf.if %16 {
      %c0_9 = arith.constant 0 : index
      %c0_10 = arith.constant 0 : index
      %17 = vector.load %arg4[%c0_9, %c0_10] : memref<8x128xf32, #tpu.memory_space<vmem>>, vector<8x128xf32>
      %18 = vector.extract_strided_slice %17 {offsets = [0, 32], sizes = [8, 1], strides = [1, 1]} : vector<8x128xf32> to vector<8x1xf32>
      %cst_11 = arith.constant 1.000000e+00 : f32
      %19 = vector.broadcast %cst_11 : f32 to vector<8x1xf32>
      %20 = arith.maximumf %18, %19 : vector<8x1xf32>
      %21 = tpu.reciprocal %20 {approx = true} : vector<8x1xf32> -> vector<8x1xf32>
      %22 = vector.broadcast %21 : vector<8x1xf32> to vector<8x128xf32>
      %23 = arith.mulf %17, %22 : vector<8x128xf32>
      %c0_12 = arith.constant 0 : index
      %c0_13 = arith.constant 0 : index
      %24 = vector.load %arg3[%c0_12, %c0_13] : memref<8x128xf32, #tpu.memory_space<vmem>>, vector<8x128xf32>
      tpu.vector_store %arg3[%c0_12, %c0_13], %23 {strides = array<i32>} : memref<8x128xf32, #tpu.memory_space<vmem>>, vector<8x128xf32>,
    } else {
    }
    return
  }
  func.func @transform_0(%arg0: i32) -> (i32, i32) {
    %c0_i32 = arith.constant 0 : i32
    %c0_i32_0 = arith.constant 0 : i32
    return %c0_i32, %arg0 : i32, i32
  }
  func.func @transform_1(%arg0: i32) -> (i32, i32) {
    %c0_i32 = arith.constant 0 : i32
    %c0_i32_0 = arith.constant 0 : i32
    return %arg0, %c0_i32 : i32, i32
  }
  func.func @transform_2(%arg0: i32) -> (i32, i32) {
    %c0_i32 = arith.constant 0 : i32
    %c0_i32_0 = arith.constant 0 : i32
    %c0_i32_1 = arith.constant 0 : i32
    return %c0_i32, %c0_i32_0 : i32, i32
  }
}

</mosaic_0001>

<bundles_post_ra>
// kernel: tpu_custom_call.1
= control target key start
LH: loop header
LB: loop body
LE: loop exit
PB: predicated region body
PF: predicated region fallthrough
CT: control target
= control target key end

     0   :  { %7 = vsyncpa [#allocation4], 0  ;;  %s710_s0 = inlined_call_operand.hbm [shape: s32[1,384], index: 0, kind: input, shape index: {}]   ;;  %s711_s1 = inlined_call_operand.hbm [shape: f32[384,128], index: 1, kind: input, shape index: {}]   ;;  %s712_s2 = inlined_call_operand.hbm [shape: f32[8,128], index: 2, kind: output, shape index: {}]  }
   0x1   :  { %9 = vsyncpa [#allocation4 + $0x1], 0 }
   0x2   :  { %10 = vsyncpa [#allocation7], 0 }
   0x3   :  { %12 = vsyncpa [#allocation7 + $0x1], 0 }
   0x4   :  { %13 = vsyncpa [#allocation5], 0  ;;  %s561_s9 = smov 0   ;;  %s563_s10 = smov 0  }
   0x5   :  { %s565_s11 = smov 0   ;;  %s567_s12 = smov 0  }
   0x6 LB: > { %s580_s13 = sadd.s32 4294967295, %s538_s12   ;;  %s583_s14 = sadd.s32 1, %s538_s12   ;;  %s538_s12 = sphi %s567_s12, %s719_s12   ;;  %s534_s11 = sphi %s565_s11, %s718_s11   ;;  %s530_s10 = sphi %s563_s10, %s717_s10   ;;  %s526_s9 = sphi %s561_s9, %s716_s9  }
   0x7   : > { %s23_s15 = ssub.s32 %s538_s12, %s583_s14  ;;  %s26_s16 = sadd.s32 1, %s534_s11 }
   0x8   : > { %p24_p0 = scmp.eq.s32.totalorder %s23_s15, 0  ;;  %p33_p1 = scmp.ne.s32.totalorder %s534_s11, %s530_s10 }
   0x9   : > { %p34_p2 = scmp.eq.s32.totalorder %s538_s12, 0  ;;  %p39_p3 = scmp.ne.s32.totalorder %s530_s10, %s526_s9 }
   0xa   : > { %s593_s17 = scalar_select %p24_p0, %s534_s11, %s26_s16  }
   0xb   : > { %p35_p4 = por %p34_p2, %p33_p1  ;;  %p40_p5 = scmp.eq.s32.totalorder %s580_s13, 0 }
   0xc   : > { %p363_p6 = scmp.lt.s32.totalorder %s538_s12, 3  ;;  %s602_s19 = sand.u32 1, %s534_s11  }
   0xd   : > { %p597_p7 = por %p40_p5, %p39_p3  ;;  %s116_s22 = scalar_lea.hbm %s710_s0, %s538_s12 }
   0xe   : > { %s113_s23 = scalar_lea.vmem [#allocation3], %s602_s19  ;;  %s118_s25 = sshll.u32 %s116_s22, 4  ;;  %s119_s25 = int_to_ptr.hbm [resolvable:$true] %s118_s25 }
   0xf   : > { %s120_s24 = sshll.u32 %s113_s23, 4  ;;  %p609_p8 = pnand %p363_p6, %p35_p4  ;;  %s121_s24 = int_to_ptr.vmem [resolvable:$true] %s120_s24 }
  0x10   : > { %p337_p9 = scmp.ge.s32.totalorder %s538_s12, 1  ;;  %p147_p10 = scmp.lt.s32.totalorder %s538_s12, 4 }
  0x11   : > { %s111_s27 = scalar_lea.sflag [#allocation4], %s602_s19  ;;  %s408_s28 = sshra.s32 %s119_s25, 4  ;;  %s409_s28 = int_to_ptr.hbm [resolvable:$true] %s408_s28 }
  0x12   : > { %s410_s29 = scalar_lea.hbm %s409_s28, 1  ;;  %p412_p12 = pneg %p609_p8 }
  0x13   : > { %p411_p11 = scmp.ne.s32.totalorder %s409_s28, %s410_s29  ;;  %s415_s4 = scalar_lea.hbm %s710_s0, 3 }
  0x14   : > { %p416_p1 = scmp.lt.s32.totalorder %s409_s28, %s710_s0  ;;  %p417_p2 = scmp.lt.s32.totalorder %s415_s4, %s410_s29 }
  0x15   : > { %p413_p13 = pnand %p412_p12, %p411_p11 }
  0x16   : > { %p418_p3 = por %p417_p2, %p416_p1 }
  0x17   : > { %p414_p0 = pneg %p413_p13 }
  0x19   : > { %p419_p4 = pnand %p418_p3, %p414_p0 }
  0x1b   : > { %422 = shalt.err (!%p419_p4)
}
  0x1c   : > { %359 = dma.hbm_to_vmem [thread:$0]  (!%p609_p8), %s119_s25, 16, %s121_s24, %s111_s27  }
  0x1d   : > { %p633_p5 = pnand %p337_p9, %p147_p10  ;;  %s334_s8 = sshll.u32 %s602_s19, 7 }
  0x1e   : > { %s347_s9 = sshll.u32 %s538_s12, 7  ;;  %s131_s21 = scalar_lea.vmem [#allocation6], %s334_s8 }
  0x1f   : > { %s136_s20 = scalar_lea.hbm %s711_s1, %s347_s9  ;;  %s139_s22 = sshll.u32 %s131_s21, 4  ;;  %s140_s22 = int_to_ptr.vmem [resolvable:$true] %s139_s22 }
  0x20   : > { %s137_s23 = sshll.u32 %s136_s20, 4  ;;  %s128_s28 = scalar_lea.sflag [#allocation7], %s602_s19  ;;  %s138_s23 = int_to_ptr.hbm [resolvable:$true] %s137_s23 }
  0x21   : > { %s438_s29 = sshra.s32 %s138_s23, 4  ;;  %s445_s27 = scalar_lea.hbm %s711_s1, 384  ;;  %s439_s29 = int_to_ptr.hbm [resolvable:$true] %s438_s29 }
  0x22   : > { %s440_s24 = scalar_lea.hbm %s439_s29, 128  ;;  %p446_p11 = scmp.lt.s32.totalorder %s439_s29, %s711_s1 }
  0x23   : > { %p441_p6 = scmp.ne.s32.totalorder %s439_s29, %s440_s24  ;;  %p447_p13 = scmp.lt.s32.totalorder %s445_s27, %s440_s24 }
  0x25   : > { %p443_p9 = pnand %p441_p6, %p412_p12  ;;  %p448_p0 = por %p447_p13, %p446_p11 }
  0x27   : > { %p444_p10 = pneg %p443_p9 }
  0x29   : > { %p449_p1 = pnand %p448_p0, %p444_p10 }
  0x2b   : > { %452 = shalt.err (!%p449_p1)
}
  0x2c   : > { %s540_s19 = smov 128   ;;  %s541_s4 = smov 8  }
  0x2d   : > { %362 = dma.hbm_to_vmem [thread:$0]  (!%p609_p8), %s138_s23, 2048, %s140_s22, %s128_s28, %s540_s19, %s540_s19, %s541_s4  }
  0x2e   : > { %151 = sbr.rel (%p633_p5) target bundleno = 364 (0x16c), region = 28  ;;  %s657_s5 = sand.u32 (!%p633_p5), 1, %s530_s10  }
  0x2f   : > { %s154_s6 = scalar_lea.sflag (!%p633_p5), [#allocation4], %s657_s5  ;;  %s156_s8 = scalar_lea.vmem (!%p633_p5), [#allocation3], %s657_s5 }
  0x33   : > { %513 = dma.done.wait (%p597_p7), %s154_s6, 16  }
  0x34   : > { %515 = vsyncadd (%p597_p7), %s154_s6, 4294967280  ;;  %s338_s26 = sshll.u32 %s657_s5, 7  ;;  %s163_s9 = scalar_lea.sflag [#allocation7], %s657_s5 }
  0x35   : > { %s667_s7 = scalar_lea.vmem [#allocation6], %s338_s26 }
  0x36   : > { %517 = dma.done.wait (%p597_p7), %s163_s9, 2048  }
  0x37   : > { %519 = vsyncadd (%p597_p7), %s163_s9, 4294965248  ;;  %p339_p8 = scmp.ne.s32.totalorder %s580_s13, 0 }
  0x39   : > { %191 = sbr.rel (%p339_p8) target bundleno = 64 (0x40), region = 40 }
  0x3e   : > { %v542_v0 = vmov 0.0  }
  0x3f   : > { %192 = vst [vmem:[#allocation2] sm:$0xff] %v542_v0 }
  0x40 PF: > { %v216_v1 = vld [vmem:[%s667_s7 + $0x78] sm:$0xff]  ;;  %v215_v2 = vld [vmem:[%s667_s7 + $0x70] sm:$0xff]  ;;  %v214_v3 = vld [vmem:[%s667_s7 + $0x68] sm:$0xff]  ;;  %v194_v13 = vlaneseq  ;;  %v543_v20 = vmov 1.0   ;;  %p342_p7 = scmp.ne.s32.totalorder %s580_s13, 2 }
  0x41   : > { %217 = vmatpush.msra.mxu0 %v216_v1  ;;  %v213_v4 = vld [vmem:[%s667_s7 + $0x60] sm:$0xff]  ;;  %v212_v5 = vld [vmem:[%s667_s7 + $0x58] sm:$0xff]  ;;  %v211_v6 = vld [vmem:[%s667_s7 + $0x50] sm:$0xff] }
  0x42   : > { %v210_v7 = vld [vmem:[%s667_s7 + $0x48] sm:$0xff]  ;;  %v209_v8 = vld [vmem:[%s667_s7 + $0x40] sm:$0xff]  ;;  %v208_v9 = vld [vmem:[%s667_s7 + $0x38] sm:$0xff]  ;;  %v195_v16 = vshrl.u32 %v194_v13, 7 }
  0x43   : > { %218 = vmatpush.msra.mxu0 %v215_v2  ;;  %v207_v10 = vld [vmem:[%s667_s7 + $0x30] sm:$0xff]  ;;  %v206_v11 = vld [vmem:[%s667_s7 + $0x28] sm:$0xff]  ;;  %v205_v12 = vld [vmem:[%s667_s7 + $0x20] sm:$0xff] }
  0x44   : > { %v204_v14 = vld [vmem:[%s667_s7 + $0x18] sm:$0xff]  ;;  %v203_v15 = vld [vmem:[%s667_s7 + $0x10] sm:$0xff]  ;;  %v202_v18 = vld [vmem:[%s667_s7 + $0x8] sm:$0xff] }
  0x45   : > { %219 = vmatpush.msra.mxu0 %v214_v3  ;;  %v404_v17 = vld [vmem:[%s156_s8] ss:$0 sm:$0xff]  ;;  %v201_v19 = vld [vmem:[%s667_s7] sm:$0xff] }
  0x46   : > { %vm197_vm0 = vcmp.eq.s32.totalorder %v195_v16, %v404_v17  ;;  %v200_v21 = vld [vmem:[#allocation2] sm:$0xff] }
  0x47   : > { %220 = vmatpush.msra.mxu0 %v213_v4 }
  0x49   : > { %221 = vmatpush.msra.mxu0 %v212_v5 }
  0x4b   : > { %222 = vmatpush.msra.mxu0 %v211_v6 }
  0x4d   : > { %223 = vmatpush.msra.mxu0 %v210_v7 }
  0x4f   : > { %224 = vmatpush.msra.mxu0 %v209_v8 }
  0x51   : > { %225 = vmatpush.msra.mxu0 %v208_v9 }
  0x53   : > { %226 = vmatpush.msra.mxu0 %v207_v10 }
  0x55   : > { %227 = vmatpush.msra.mxu0 %v206_v11 }
  0x57   : > { %228 = vmatpush.msra.mxu0 %v205_v12 }
  0x59   : > { %229 = vmatpush.msra.mxu0 %v204_v14 }
  0x5b   : > { %230 = vmatpush.msra.mxu0 %v203_v15 }
  0x5d   : > { %231 = vmatpush.msra.mxu0 %v202_v18 }
  0x5f   : > { %232 = vmatpush.msra.mxu0 %v201_v19 }
  0x60   : > { %341 = vmatmul.msk.f32.vlgmr.msra.gmra.mxu0 %vm197_vm0, %v543_v20 }
  0xdc   : > { %242 = sbr.rel (%p342_p7) target bundleno = 359 (0x167), region = 44 }
  0xdd   : > { %v234_v22 = vpop.f32.mrf.mxu0 }
  0xde   : > { %v237_v23 = vadd.f32 %v234_v22, %v200_v21 }
  0xe0   : > { %238 = vst [vmem:[#allocation2] sm:$0xff] %v237_v23 }
  0xe1   : > { %v544_v25 = vmov 32  }
  0xe2   : > { %405 = vset.pattern.permute.xlu0 %v544_v25 }
  0xe7   : > { %v243_v24 = vld [vmem:[#allocation2] sm:$0xff] }
  0xe8   : > { %v244_v26 = vmax.f32 %v243_v24, 1.0 }
  0xea   : > { %406 = vrcp.f32 %v244_v26 }
  0xf0   : > { %v407_v27 = vpop.eup %406 }
  0xf1   : > { %248 = vperm.xlu0 %405, %v407_v27  }
 0x163   : > { %v249_v28 = vpop.permute.xlu0 %248 }
 0x164   : > { %v251_v29 = vmul.f32 %v249_v28, %v243_v24 }
 0x166   : > { %252 = vst [vmem:[#allocation8] sm:$0xff] %v251_v29 }
 0x167 PF: > { %p364_p12 = scmp.eq.s32.totalorder %s580_s13, 2  ;;  %s545_s18 = smov [#allocation8]  }
 0x168   : > { %s259_s15 = sshll.u32 %s545_s18, 4  ;;  %s261_s21 = sshll.u32 %s712_s2, 4  ;;  %s260_s15 = int_to_ptr.vmem [resolvable:$true] %s259_s15  ;;  %s262_s21 = int_to_ptr.hbm [resolvable:$true] %s261_s21 }
 0x169   : > { %353 = dma.vmem_to_hbm [thread:$0]  (%p364_p12), %s260_s15, 128, %s262_s21, [#allocation5]  }
 0x16a   : > { %521 = dma.done.wait (%p364_p12), [#allocation5], 128  }
 0x16b   : > { %523 = vsyncadd (%p364_p12), [#allocation5], 4294967168 }
 0x16c PF: > { %p16_p2 = scmp.ge.s32.totalorder %s583_s14, 5   ;;  %s716_s9 = smov %s530_s10 }
 0x16d   : > { %s717_s10 = smov %s534_s11  ;;  %s718_s11 = smov %s593_s17 }
 0x16e   : > { %s719_s12 = smov %s583_s14  ;;  %18 = sbr.rel (!%p16_p2) target bundleno = 6 (0x6), region = 86 }
 0x173   :  { %275 = vsyncpa [#allocation4], 1 }
 0x174   :  { %277 = vsyncpa [#allocation4 + $0x1], 1 }
 0x175   :  { %278 = vsyncpa [#allocation7], 1 }
 0x176   :  { %280 = vsyncpa [#allocation7 + $0x1], 1 }
 0x177   :  { %281 = vsyncpa [#allocation5], 1 }
 0x178   :  { %283 = vsyncpa [#allocation5 + $0x1], 1 }

</bundles_post_ra>
